<compile_context>
chip_gen: v7x
topology: tpu7x:2x2x1
jax: 0.10.0
libtpu: 0.0.40
codegen_flags: <defaults>
</compile_context>

<pallas_src>
import math

import jax
import jax.numpy as jnp
from jax.experimental import pallas as pl
from jax.experimental.pallas import tpu as pltpu

_LANE = 128
_SUBLANE = 8
_C_PAD = _LANE  # pad the class axis to a full 128-lane register -> unmasked vector stores


def _round_up(n, m):
    return ((n + m - 1) // m) * m


def _vmem_limit_bytes(raw_tile_bytes):
    # double-buffered tiles + headroom; conservative cap for v7x (64 MiB physical / 32 scoped).
    return int(min(max(4 * raw_tile_bytes + (2 << 20), 8 << 20), 32 << 20))


# ----------------------------------------------------------------------------
# Fused kernel: synthetic per-timestep search_forward (sigmoid(x @ W + b)) immediately reduced
# into a pairwise distance against the resident label block.
#   x_seqs [P, Tw, J]  vs  label_window [C, Tw, J]  ->  D [P, C]
#   'neuron'   : mean_t( mean_j |pred - label| )
#   'activity' : mean_t( | mean_j pred - mean_j label | )
# TODO(synk): the original _per_neuron_similarity_fn / _activity_similarity_fn bodies are not
#             provided; re-implemented as mean-abs-difference distances (smaller = more similar),
#             consistent with topk(largest=False)/min in the module.
# ----------------------------------------------------------------------------
def _make_neuron_binary_kernel(Tw, inv_tj):
    # Exact rewrite for binary labels: |p - l| = p + l - 2*p*l  (l in {0,1}, p = sigmoid in [0,1])
    #   D = (sum_t  pred_t @ (1 - 2*lab_t)^T  +  sum_{t,j} lab) * inv_tj
    # labT' and the label sums are precomputed in the wrapper (grid-invariant, VMEM-resident).
    def kernel(x_ref, w_ref, b_ref, labTp_ref, sl_ref, out_ref):
        x = x_ref[...]                       # [TP, Tw, J] f32 row tile
        W = w_ref[...]                       # [J, J]      resident weights
        bias = b_ref[...]                    # [1, J]      resident bias
        labTp = labTp_ref[...]               # [Tw, J, C_PAD]  (1 - 2*label, per-t transpose)
        acc = jnp.zeros(out_ref.shape, jnp.float32)
        for t in range(Tw):                  # Tw is a tiny compile-time constant (1 or T_l)
            pt = jax.nn.sigmoid(
                jnp.dot(x[:, t, :], W, preferred_element_type=jnp.float32) + bias)
            acc = acc + jnp.dot(pt, labTp[t], preferred_element_type=jnp.float32)
        out_ref[...] = (acc + sl_ref[...]) * inv_tj
    return kernel


def _make_neuron_generic_kernel(Tw, inv_tj):
    # Fallback for non-binary labels (not exercised in the demo). TP is capped in the wrapper so
    # the per-t [TP, C_PAD, J] broadcast stays small.
    def kernel(x_ref, w_ref, b_ref, lab_ref, out_ref):
        x = x_ref[...]
        W = w_ref[...]
        bias = b_ref[...]
        lab = lab_ref[...]                   # [C_PAD, Tw, J] resident labels
        acc = jnp.zeros(out_ref.shape, jnp.float32)
        for t in range(Tw):
            pt = jax.nn.sigmoid(
                jnp.dot(x[:, t, :], W, preferred_element_type=jnp.float32) + bias)
            d = jnp.abs(pt[:, None, :] - lab[:, t, :][None, :, :])      # [TP, C_PAD, J]
            acc = acc + jnp.sum(d, axis=-1)
        out_ref[...] = acc * inv_tj
    return kernel


def _make_activity_kernel(Tw, inv_t):
    def kernel(x_ref, w_ref, b_ref, lm_ref, out_ref):
        x = x_ref[...]
        W = w_ref[...]
        bias = b_ref[...]
        lm = lm_ref[...]                     # [Tw, C_PAD]  precomputed mean_j(label)
        acc = jnp.zeros(out_ref.shape, jnp.float32)
        for t in range(Tw):
            pt = jax.nn.sigmoid(
                jnp.dot(x[:, t, :], W, preferred_element_type=jnp.float32) + bias)
            pm = jnp.mean(pt, axis=-1, keepdims=True)                   # [TP, 1]
            acc = acc + jnp.abs(pm - lm[t:t + 1, :])                    # [TP, C_PAD]
        out_ref[...] = acc * inv_t
    return kernel


def fused_forward_similarity(x_seqs, label_window, W, bvec, mode="neuron", labels_binary=False):
    """D[p, c] = mean_t sim(sigmoid(x_seqs[p, t] @ W + b), label_window[c, t]) -> [P, C] f32.

    One pallas_call per invocation: the synthetic per-timestep model.search_forward and the
    pairwise similarity + mean-over-t reduction are fused, so predictions never leave VMEM.
    """
    if mode not in ("neuron", "activity"):
        raise ValueError(f"Did not recognize loss_function! Given: {mode}")

    P, Tw, J = x_seqs.shape
    C = label_window.shape[0]

    # Row tiling: large tiles, but keep >=2 "parallel" grid steps whenever rows allow so both
    # v7x TensorCores get work (no effect on v5e/v6e).  The generic-neuron fallback caps TP to
    # bound its [TP, C_PAD, J] live intermediate.
    tp_cap = 64 if (mode == "neuron" and not labels_binary) else 512
    P8 = _round_up(P, _SUBLANE)
    TP = min(tp_cap, P8)
    if P8 > _SUBLANE:
        TP = min(TP, _round_up(-(-P8 // 2), _SUBLANE))
    P_pad = _round_up(P, TP)

    x = x_seqs.astype(jnp.float32)
    if P_pad != P:
        x = jnp.pad(x, ((0, P_pad - P), (0, 0), (0, 0)))
    W32 = W.astype(jnp.float32)
    b2d = bvec.reshape(1, J).astype(jnp.float32)
    lab = label_window.astype(jnp.float32)
    lab_pad = jnp.pad(lab, ((0, _C_PAD - C), (0, 0), (0, 0)))            # [C_PAD, Tw, J]

    common_in_specs = [
        pl.BlockSpec((TP, Tw, J), lambda i: (i, 0, 0)),                  # row tile of sequences
        pl.BlockSpec((J, J), lambda i: (0, 0)),                          # resident weights
        pl.BlockSpec((1, J), lambda i: (0, 0)),                          # resident bias
    ]
    out_spec = pl.BlockSpec((TP, _C_PAD), lambda i: (i, 0))              # lane-dense output
    grid = (pl.cdiv(P_pad, TP),)

    if mode == "neuron" and labels_binary:
        labTp = jnp.transpose(1.0 - 2.0 * lab_pad, (1, 2, 0))            # [Tw, J, C_PAD]
        # zero the padded class columns so they stay exactly 0 in the output (sliced away anyway)
        labTp = labTp * (jnp.arange(_C_PAD)[None, None, :] < C)
        sl = jnp.sum(lab_pad, axis=(1, 2)).reshape(1, _C_PAD)            # [1, C_PAD]
        kernel = _make_neuron_binary_kernel(Tw, 1.0 / (Tw * J))
        extra_inputs = (labTp, sl)
        extra_specs = [pl.BlockSpec((Tw, J, _C_PAD), lambda i: (0, 0, 0)),
                       pl.BlockSpec((1, _C_PAD), lambda i: (0, 0))]
    elif mode == "neuron":
        kernel = _make_neuron_generic_kernel(Tw, 1.0 / (Tw * J))
        extra_inputs = (lab_pad,)
        extra_specs = [pl.BlockSpec((_C_PAD, Tw, J), lambda i: (0, 0, 0))]
    else:  # activity
        lm = jnp.transpose(jnp.mean(lab_pad, axis=-1), (1, 0))           # [Tw, C_PAD]
        kernel = _make_activity_kernel(Tw, 1.0 / Tw)
        extra_inputs = (lm,)
        extra_specs = [pl.BlockSpec((Tw, _C_PAD), lambda i: (0, 0))]

    raw = (TP * Tw * J + J * J + J + TP * _C_PAD
           + sum(int(math.prod(a.shape)) for a in extra_inputs)) * 4
    out = pl.pallas_call(
        kernel,
        out_shape=jax.ShapeDtypeStruct((P_pad, _C_PAD), jnp.float32),
        grid=grid,
        in_specs=common_in_specs + extra_specs,
        out_specs=out_spec,
        compiler_params=pltpu.CompilerParams(
            dimension_semantics=("parallel",),
            vmem_limit_bytes=_vmem_limit_bytes(raw),
        ),
    )(x, W32, b2d, *extra_inputs)
    return out[:P, :C]


# ----------------------------------------------------------------------------
# ParallelSearch.forward
# ----------------------------------------------------------------------------
def parallel_search_forward(params, x, lens):
    """Mirrors ParallelSearch.forward(x, lens). Returns (pred_label, None)."""
    B, T, J = x.shape
    C = params["num_classes"]
    N = params["parallel_beams"]
    mode = params["similarity_fn_descr"]
    labels_binary = params["labels_binary"]
    label_seqs = params["label_seqs"]   # [C, T_l, J]  (model.spikoder.get_all_labels)
    sos = params["sos"]                 # [J]          (model.special_token_encoder)
    W, bvec = params["W"], params["b"]

    lens = lens.astype(jnp.int32)

    # sos.repeat(B, 1) + place_preceeding_and_following_sos
    sos_b = jnp.broadcast_to(sos[None, :], (B, J)).astype(x.dtype)
    x = x.at[jnp.arange(B), lens, :].set(sos_b)
    x = jnp.concatenate([sos_b[:, None, :], x], axis=1)                  # [B, T+1, J]

    # --- step 1 -------------------------------------------------------------------------
    # Per-timestep model: only the row at lens+1 (the sos token) of the first search_forward is
    # ever read back, so the forward + get_n_most_similar_label_sofar run fused on those B rows.
    # TODO(synk): if the real model.search_forward is recurrent over time, restore the full
    #             [B, T+1, J] forward here (and the full [B*N, T+1, J] forward below).
    x_row = x[jnp.arange(B), lens + 1][:, None, :]                       # [B, 1, J]
    sim1 = fused_forward_similarity(x_row, label_seqs[:, :1, :], W, bvec, mode, labels_binary)
    n_best = jnp.argsort(sim1, axis=-1)[:, :N]                           # topk(largest=False)

    # --- step 2 -------------------------------------------------------------------------
    # fill_with_n_best writes label_seqs[n_best[b], t] into exactly the rows the subsequent
    # gather reads back, so (per-timestep model) the window fed to search_forward IS
    # label_seqs[n_best] and the distance depends only on the class index.  Compute one C x C
    # distance table (forward + similarity fused) and gather with n_best — O(C) instead of
    # O(B*N) sequences, no repeat_interleave / HBM scatter / full-sequence forward.
    dist_cc = fused_forward_similarity(label_seqs, label_seqs, W, bvec, mode, labels_binary)
    sim = dist_cc[n_best.reshape(B * N)].reshape(B, N, C)

    # extract_most_similar_label
    valuesC = jnp.min(sim, axis=-1)                                      # [B, N]
    indicesC = jnp.argmin(sim, axis=-1)                                  # [B, N]
    indicesN = jnp.argmin(valuesC, axis=-1)                              # [B]
    label = jnp.take_along_axis(indicesC, indicesN[:, None], axis=-1)
    return jnp.squeeze(label), None


# ----------------------------------------------------------------------------
# main
# ----------------------------------------------------------------------------
if __name__ == "__main__":
    # Config (mirrors ParallelSearch.__init__ / create_from_config)
    num_bins = 2
    input_dim_cfg = 64
    J = input_dim_cfg // num_bins    # self.input_dim after division -> 32
    B = 2
    T = 8
    T_l = 4                          # encoding_length
    C = 5                            # num_classes
    N = 3                            # parallel_beams
    similarity_fn_descr = "neuron"

    key = jax.random.PRNGKey(0)
    k_x, k_lab, k_w, k_b = jax.random.split(key, 4)

    # Inputs (spike-like binary data) and lengths.  Constraint: lens <= T - T_l.
    x = jax.random.bernoulli(k_x, p=0.3, shape=(B, T, J)).astype(jnp.float32)
    lens = jnp.array([3, 4], dtype=jnp.int32)
    assert int(jnp.max(lens)) <= T - T_l, "lens must satisfy lens <= T - T_l"

    # Deterministic synthetic "model" parameters.
    label_seqs = jax.random.bernoulli(k_lab, p=0.5, shape=(C, T_l, J)).astype(jnp.float32)
    sos = jnp.ones((J,), dtype=jnp.float32)                       # special token encoding
    W = 0.1 * jax.random.normal(k_w, (J, J), dtype=jnp.float32)   # search_forward weights
    b = 0.1 * jax.random.normal(k_b, (J,), dtype=jnp.float32)

    # MXU fast path for the neuron distance is only valid for binary label encodings.
    # (One host sync here at setup time; never inside a jitted path.)
    labels_binary = bool(jnp.all((label_seqs == 0.0) | (label_seqs == 1.0)))

    params = dict(
        num_classes=C,
        parallel_beams=N,
        T_l=T_l,
        similarity_fn_descr=similarity_fn_descr,
        labels_binary=labels_binary,
        label_seqs=label_seqs,
        sos=sos,
        W=W,
        b=b,
    )

    pred_label, aux = parallel_search_forward(params, x, lens)
    pred_label = jax.block_until_ready(pred_label)
    assert pred_label.shape == (B,)
    assert aux is None
    print("KERNEL_OK")
</pallas_src>

<mosaic_0001>
module attributes {stable_mosaic.version = 11 : i64} {
  func.func @kernel(%arg0: i32, %arg1: memref<8x1x32xf32, #tpu.memory_space<vmem>>, %arg2: memref<32x32xf32, #tpu.memory_space<vmem>>, %arg3: memref<1x32xf32, #tpu.memory_space<vmem>>, %arg4: memref<1x32x128xf32, #tpu.memory_space<vmem>>, %arg5: memref<1x128xf32, #tpu.memory_space<vmem>>, %arg6: memref<8x128xf32, #tpu.memory_space<vmem>>) attributes {dimension_semantics = [#tpu.dimension_semantics<parallel>], iteration_bounds = array<i64: 1>, scalar_prefetch = 0 : i64, scratch_operands = 0 : i64, tpu.core_type = #tpu.core_type<tc>, window_params = [{transform_indices = @transform_0, window_bounds = array<i64: 8, 1, 32>}, {pipeline_mode = #tpu.pipeline_mode<synchronous>, transform_indices = @transform_1, window_bounds = array<i64: 32, 32>}, {pipeline_mode = #tpu.pipeline_mode<synchronous>, transform_indices = @transform_2, window_bounds = array<i64: 1, 32>}, {pipeline_mode = #tpu.pipeline_mode<synchronous>, transform_indices = @transform_3, window_bounds = array<i64: 1, 32, 128>}, {pipeline_mode = #tpu.pipeline_mode<synchronous>, transform_indices = @transform_4, window_bounds = array<i64: 1, 128>}, {transform_indices = @transform_5, window_bounds = array<i64: 8, 128>}]} {
    %c0 = arith.constant 0 : index
    %c0_0 = arith.constant 0 : index
    %c0_1 = arith.constant 0 : index
    %0 = vector.load %arg1[%c0, %c0_0, %c0_1] : memref<8x1x32xf32, #tpu.memory_space<vmem>>, vector<8x1x32xf32>
    %c0_2 = arith.constant 0 : index
    %c0_3 = arith.constant 0 : index
    %1 = vector.load %arg2[%c0_2, %c0_3] : memref<32x32xf32, #tpu.memory_space<vmem>>, vector<32x32xf32>
    %c0_4 = arith.constant 0 : index
    %c0_5 = arith.constant 0 : index
    %2 = vector.load %arg3[%c0_4, %c0_5] : memref<1x32xf32, #tpu.memory_space<vmem>>, vector<1x32xf32>
    %c0_6 = arith.constant 0 : index
    %c0_7 = arith.constant 0 : index
    %c0_8 = arith.constant 0 : index
    %3 = vector.load %arg4[%c0_6, %c0_7, %c0_8] : memref<1x32x128xf32, #tpu.memory_space<vmem>>, vector<1x32x128xf32>
    %cst = arith.constant 0.000000e+00 : f32
    %4 = vector.broadcast %cst : f32 to vector<8x128xf32>
    %5 = vector.shape_cast %0 : vector<8x1x32xf32> to vector<8x32xf32>
    %cst_9 = arith.constant dense<0.000000e+00> : vector<8x32xf32>
    %6 = tpu.matmul %5, %1, %cst_9 {dimension_numbers = #tpu.dot_dimension_numbers<[1], [0], [0], [1], [0, 0, 1, 1], [], []>} : vector<8x32xf32>, vector<32x32xf32>, vector<8x32xf32> -> vector<8x32xf32>
    %7 = vector.broadcast %2 : vector<1x32xf32> to vector<8x32xf32>
    %8 = arith.addf %6, %7 : vector<8x32xf32>
    %9 = arith.negf %8 : vector<8x32xf32>
    %10 = math.exp %9 : vector<8x32xf32>
    %cst_10 = arith.constant 1.000000e+00 : f32
    %11 = vector.broadcast %cst_10 : f32 to vector<8x32xf32>
    %12 = arith.addf %11, %10 : vector<8x32xf32>
    %13 = arith.divf %11, %12 : vector<8x32xf32>
    %14 = vector.shape_cast %3 : vector<1x32x128xf32> to vector<32x128xf32>
    %cst_11 = arith.constant dense<0.000000e+00> : vector<8x128xf32>
    %15 = tpu.matmul %13, %14, %cst_11 {dimension_numbers = #tpu.dot_dimension_numbers<[1], [0], [0], [1], [0, 0, 1, 1], [], []>} : vector<8x32xf32>, vector<32x128xf32>, vector<8x128xf32> -> vector<8x128xf32>
    %16 = arith.addf %4, %15 : vector<8x128xf32>
    %c0_12 = arith.constant 0 : index
    %c0_13 = arith.constant 0 : index
    %17 = vector.load %arg5[%c0_12, %c0_13] : memref<1x128xf32, #tpu.memory_space<vmem>>, vector<1x128xf32>
    %18 = vector.broadcast %17 : vector<1x128xf32> to vector<8x128xf32>
    %19 = arith.addf %16, %18 : vector<8x128xf32>
    %cst_14 = arith.constant 3.125000e-02 : f32
    %20 = vector.broadcast %cst_14 : f32 to vector<8x128xf32>
    %21 = arith.mulf %19, %20 : vector<8x128xf32>
    %c0_15 = arith.constant 0 : index
    %c0_16 = arith.constant 0 : index
    %22 = vector.load %arg6[%c0_15, %c0_16] : memref<8x128xf32, #tpu.memory_space<vmem>>, vector<8x128xf32>
    tpu.vector_store %arg6[%c0_15, %c0_16], %21 {strides = array<i32>} : memref<8x128xf32, #tpu.memory_space<vmem>>, vector<8x128xf32>,
    return
  }
  func.func @transform_0(%arg0: i32) -> (i32, i32, i32) {
    %c0_i32 = arith.constant 0 : i32
    %c0_i32_0 = arith.constant 0 : i32
    %c0_i32_1 = arith.constant 0 : i32
    return %arg0, %c0_i32, %c0_i32_0 : i32, i32, i32
  }
  func.func @transform_1(%arg0: i32) -> (i32, i32) {
    %c0_i32 = arith.constant 0 : i32
    %c0_i32_0 = arith.constant 0 : i32
    %c0_i32_1 = arith.constant 0 : i32
    return %c0_i32, %c0_i32_0 : i32, i32
  }
  func.func @transform_2(%arg0: i32) -> (i32, i32) {
    %c0_i32 = arith.constant 0 : i32
    %c0_i32_0 = arith.constant 0 : i32
    %c0_i32_1 = arith.constant 0 : i32
    return %c0_i32, %c0_i32_0 : i32, i32
  }
  func.func @transform_3(%arg0: i32) -> (i32, i32, i32) {
    %c0_i32 = arith.constant 0 : i32
    %c0_i32_0 = arith.constant 0 : i32
    %c0_i32_1 = arith.constant 0 : i32
    %c0_i32_2 = arith.constant 0 : i32
    return %c0_i32, %c0_i32_0, %c0_i32_1 : i32, i32, i32
  }
  func.func @transform_4(%arg0: i32) -> (i32, i32) {
    %c0_i32 = arith.constant 0 : i32
    %c0_i32_0 = arith.constant 0 : i32
    %c0_i32_1 = arith.constant 0 : i32
    return %c0_i32, %c0_i32_0 : i32, i32
  }
  func.func @transform_5(%arg0: i32) -> (i32, i32) {
    %c0_i32 = arith.constant 0 : i32
    %c0_i32_0 = arith.constant 0 : i32
    return %arg0, %c0_i32 : i32, i32
  }
}

</mosaic_0001>

<bundles_post_ra>
// kernel: tpu_custom_call.1
= control target key start
LH: loop header
LB: loop body
LE: loop exit
PB: predicated region body
PF: predicated region fallthrough
CT: control target
= control target key end

     0   :  { %10 = vsyncpa [#allocation3], 0  ;;  %s582_s0 = inlined_call_operand.hbm [shape: f32[8,1,32], index: 0, kind: input, shape index: {}]   ;;  %s583_s1 = inlined_call_operand.hbm [shape: f32[32,32], index: 1, kind: input, shape index: {}]   ;;  %s584_s2 = inlined_call_operand.vmem [shape: f32[1,32], index: 2, kind: input, shape index: {}]   ;;  %s585_s3 = inlined_call_operand.hbm [shape: f32[1,32,128], index: 3, kind: input, shape index: {}]   ;;  %s586_s4 = inlined_call_operand.vmem [shape: f32[1,128], index: 4, kind: input, shape index: {}]   ;;  %s587_s5 = inlined_call_operand.hbm [shape: f32[8,128], index: 5, kind: output, shape index: {}]  }
   0x1   :  { %11 = vsyncpa [#allocation6], 0 }
   0x2   :  { %12 = vsyncpa [#allocation4], 0  ;;  %s478_s18 = smov [#allocation5]   ;;  %s384_s22 = scalar_lea.hbm %s583_s1, 512 }
   0x3   :  { %s30_s19 = sshll.u32 %s478_s18, 4  ;;  %p385_p0 = scmp.ne.s32.totalorder %s583_s1, %s384_s22  ;;  %s31_s19 = int_to_ptr.vmem [resolvable:$true] %s30_s19 }
   0x4   :  { %p388_p1 = scmp.lt.u32.totalorder %s384_s22, %s583_s1 }
   0x6   :  { %p390_p2 = pnand %p388_p1, %p385_p0 }
   0x8   :  { %393 = shalt.err (!%p390_p2)
}
   0x9   :  { %s394_s27 = scalar_lea.vmem %s31_s19, 512  ;;  %p399_p4 = scmp.lt.s32.totalorder %s31_s19, %s31_s19 }
   0xa   :  { %p395_p3 = scmp.ne.s32.totalorder %s31_s19, %s394_s27  ;;  %p400_p5 = scmp.lt.s32.totalorder %s394_s27, %s394_s27 }
   0xc   :  { %p401_p6 = por %p400_p5, %p399_p4 }
   0xe   :  { %p402_p7 = pnand %p401_p6, %p395_p3 }
  0x10   :  { %405 = shalt.err (!%p402_p7)
}
  0x11   :  { %s479_s28 = smov 128   ;;  %s480_s29 = smov 8  }
  0x12   :  { %36 = dma.hbm_to_vmem [thread:$0]  %s583_s1, 512, %s31_s19, [#allocation6], %s479_s28, %s479_s28, %s480_s29  }
  0x13   :  { %s481_s7 = smov [#allocation2]   ;;  %s406_s11 = scalar_lea.hbm %s582_s0, 128 }
  0x14   :  { %s18_s8 = sshll.u32 %s481_s7, 4  ;;  %p407_p8 = scmp.ne.s32.totalorder %s582_s0, %s406_s11  ;;  %s19_s8 = int_to_ptr.vmem [resolvable:$true] %s18_s8 }
  0x15   :  { %p410_p9 = scmp.lt.u32.totalorder %s406_s11, %s582_s0 }
  0x17   :  { %p412_p10 = pnand %p410_p9, %p407_p8 }
  0x19   :  { %415 = shalt.err (!%p412_p10)
}
  0x1a   :  { %s416_s16 = scalar_lea.vmem %s19_s8, 128  ;;  %p421_p12 = scmp.lt.s32.totalorder %s19_s8, %s19_s8 }
  0x1b   :  { %p417_p11 = scmp.ne.s32.totalorder %s19_s8, %s416_s16  ;;  %p422_p13 = scmp.lt.s32.totalorder %s416_s16, %s416_s16 }
  0x1d   :  { %p423_p0 = por %p422_p13, %p421_p12 }
  0x1f   :  { %p424_p1 = pnand %p423_p0, %p417_p11 }
  0x21   :  { %427 = shalt.err (!%p424_p1)
}
  0x22   :  { %s482_s1 = smov 16   ;;  %s483_s17 = smov 1  }
  0x23   :  { %24 = dma.hbm_to_vmem [thread:$0]  %s582_s0, 128, %s19_s8, [#allocation3], %s482_s1, %s482_s1, %s483_s17  }
  0x24   :  { %s484_s20 = smov [#allocation7]   ;;  %s428_s24 = scalar_lea.hbm %s585_s3, 512 }
  0x25   :  { %s44_s21 = sshll.u32 %s484_s20, 4  ;;  %p429_p2 = scmp.ne.s32.totalorder %s585_s3, %s428_s24  ;;  %s45_s21 = int_to_ptr.vmem [resolvable:$true] %s44_s21 }
  0x26   :  { %p432_p3 = scmp.lt.u32.totalorder %s428_s24, %s585_s3 }
  0x28   :  { %p434_p4 = pnand %p432_p3, %p429_p2 }
  0x2a   :  { %437 = shalt.err (!%p434_p4)
}
  0x2b   :  { %s438_s6 = scalar_lea.vmem %s45_s21, 512  ;;  %p443_p6 = scmp.lt.s32.totalorder %s45_s21, %s45_s21 }
  0x2c   :  { %p439_p5 = scmp.ne.s32.totalorder %s45_s21, %s438_s6  ;;  %p444_p7 = scmp.lt.s32.totalorder %s438_s6, %s438_s6 }
  0x2e   :  { %p445_p8 = por %p444_p7, %p443_p6 }
  0x30   :  { %p446_p9 = pnand %p445_p8, %p439_p5 }
  0x32   :  { %449 = shalt.err (!%p446_p9)
}
  0x33   :  { %50 = dma.hbm_to_vmem [thread:$0]  %s585_s3, 512, %s45_s21, [#allocation6], %s479_s28, %s479_s28, %s480_s29  }
  0x34   :  { %472 = dma.done.wait [#allocation3], 128  }
  0x35   :  { %473 = vsyncadd [#allocation3], 4294967168 }
  0x36   :  { %474 = dma.done.wait [#allocation6], 1024  }
  0x37   :  { %475 = vsyncadd [#allocation6], 4294966272  ;;  %v100_v0 = vlaneseq  ;;  %v485_v1 = vmov 0.0|0.0   ;;  %vm486_vm0 = vmmov 0   ;;  %v487_v2 = vmov 0.0   ;;  %v70_v7 = vld [vmem:[#allocation5] sm:$0xff] }
  0x38   :  { %356 = vmatprep.subr.bf16.mxu0 %v485_v1  ;;  %342 = vmatprep.mubr.msk.f32.mxu0 %vm486_vm0, %v487_v2  ;;  %v488_v3 = vmov 1966171168   ;;  %v71_v8 = vld [vmem:[#allocation5 + $0x8] sm:$0xff]  ;;  %v72_v9 = vld [vmem:[#allocation5 + $0x10] sm:$0xff]  ;;  %v73_v12 = vld [vmem:[#allocation5 + $0x18] sm:$0xff]  ;;  %vm142_vm1 = vcmask 261120  }
  0x39   :  { %v98_v4 = vunpack.c.l.s4 %v488_v3  ;;  %362 = vmatprep.subr.bf16.mxu1 %v485_v1  ;;  %353 = vmatprep.mubr.msk.f32.mxu1 %vm486_vm0, %v487_v2  ;;  %v101_v5 = vshrl.u32 %v100_v0, 7  ;;  %v357_v11 = vpack.c.bf16 %v71_v8, %v70_v7  ;;  %v62_v13 = vld [vmem:[#allocation2] sm:$0x1]  ;;  %v63_v14 = vld [vmem:[#allocation2 + $0x1] sm:$0x1]  ;;  %v360_v19 = vpack.c.bf16 %v73_v12, %v72_v9  ;;  %v75_v35 = vld [vmem:[#allocation7] sm:$0xff] }
  0x3a   :  { %v64_v15 = vld [vmem:[#allocation2 + $0x2] sm:$0x1]  ;;  %v65_v16 = vld [vmem:[#allocation2 + $0x3] sm:$0x1]  ;;  %v66_v17 = vld [vmem:[#allocation2 + $0x4] sm:$0x1]  ;;  %v93_v18 = vcombine.low %v62_v13, %v63_v14 }
  0x3b   :  { %v99_v6 = vunpack.c.0.s8 %v98_v4  ;;  %358 = vmatpush3.bf16.msra.mxu0 %v357_v11  ;;  %v67_v20 = vld [vmem:[#allocation2 + $0x5] sm:$0x1]  ;;  %v68_v21 = vld [vmem:[#allocation2 + $0x6] sm:$0x1]  ;;  %v69_v22 = vld [vmem:[#allocation2 + $0x7] sm:$0x1]  ;;  %v94_v23 = vcombine.low %v64_v15, %v65_v16 }
  0x3c   :  { %359 = vmatprep.subr.bf16.mxu0 %v485_v1  ;;  %v95_v24 = vcombine.low %v66_v17, %v67_v20  ;;  %v96_v25 = vcombine.low %v68_v21, %v69_v22  ;;  %v76_v36 = vld [vmem:[#allocation7 + $0x8] sm:$0xff]  ;;  %v77_v37 = vld [vmem:[#allocation7 + $0x10] sm:$0xff]  ;;  %v78_v39 = vld [vmem:[#allocation7 + $0x18] sm:$0xff]  ;;  %s489_s9 = smov [#allocation8]  }
  0x3d   :  { %v102_v10 = vsub.s32 %v99_v6, %v101_v5  ;;  %v363_v38 = vpack.c.bf16 %v76_v36, %v75_v35  ;;  %v366_v40 = vpack.c.bf16 %v78_v39, %v77_v37  ;;  %v319_v41 = vld [vmem:[%s584_s2] ss:$0 sm:$0xff]  ;;  %s309_s10 = sshll.u32 %s489_s9, 4  ;;  %s310_s10 = int_to_ptr.vmem [resolvable:$true] %s309_s10 }
  0x3e   :  { %v322_v49 = vld [vmem:[%s586_s4] ss:$0 sm:$0xff]  ;;  %s450_s2 = scalar_lea.vmem %s310_s10, 128  ;;  %p455_p11 = scmp.lt.s32.totalorder %s310_s10, %s310_s10 }
  0x3f   :  { %v103_v26 = vrot.slane %v93_v18, %v102_v10  ;;  %v110_v27 = vrot.slane %v94_v23, %v102_v10  ;;  %v117_v28 = vrot.slane %v95_v24, %v102_v10  ;;  %v124_v29 = vrot.slane %v96_v25, %v102_v10  ;;  %361 = vmatpush3.bf16.msra.mxu0 %v360_v19  ;;  %p451_p10 = scmp.ne.s32.totalorder %s310_s10, %s450_s2  ;;  %p456_p12 = scmp.lt.s32.totalorder %s450_s2, %s450_s2 }
  0x40   :  { %364 = vmatpush3.bf16.msra.mxu1 %v363_v38 }
  0x41   :  { %v125_v30 = vcombine.low %v103_v26, %v110_v27  ;;  %v126_v31 = vcombine.low %v117_v28, %v124_v29  ;;  %365 = vmatprep.subr.bf16.mxu1 %v485_v1  ;;  %p457_p13 = por %p456_p12, %p455_p11 }
  0x43   :  { %v133_v32 = vrot.slane %v125_v30, %v102_v10  ;;  %v140_v33 = vrot.slane %v126_v31, %v102_v10  ;;  %p458_p0 = pnand %p457_p13, %p451_p10 }
  0x44   :  { %367 = vmatpush3.bf16.msra.mxu1 %v366_v40 }
  0x45   :  { %v141_v34 = vcombine.low %v133_v32, %v140_v33 }
  0x47   :  { %343 = vmatmul.mubr.msk.f32.vlgmr.msra.gmra.mrb[0].mxu0 %vm142_vm1, %v141_v34 }
 0x11a   :  { %v211_v42 = vpop.f32.mrb[0].mxu0 }
 0x11b   :  { %v212_v43 = vadd.f32 %v319_v41, %v211_v42  ;;  %v344_v44 = vpop.f32.mrb[1].mxu0 }
 0x11d   :  { %v321_v45 = vmul.f32 -1.442695, %v212_v43 }
 0x11f   :  { %380 = vpow2.f32 %v321_v45 }
 0x129   :  { %v381_v46 = vpop.eup %380 }
 0x12a   :  { %v218_v47 = vadd.f32 1.0, %v381_v46 }
 0x12c   :  { %382 = vrcp.f32 %v218_v47 }
 0x136   :  { %v383_v48 = vpop.eup %382 }
 0x137   :  { %354 = vmatmul.mubr.msk.f32.vlgmr.msra.gmra.mrb[0].mxu1 %vm142_vm1, %v383_v48 }
 0x20a   :  { %v297_v50 = vpop.f32.mrb[0].mxu1 }
 0x20b   :  { %v298_v51 = vadd.f32 %v322_v49, %v297_v50  ;;  %v355_v52 = vpop.f32.mrb[1].mxu1 }
 0x20d   :  { %v301_v53 = vmul.f32 0.03125, %v298_v51 }
 0x20f   :  { %302 = vst [vmem:[#allocation8] sm:$0xff] %v301_v53 }
 0x210   :  { %461 = shalt.err (!%p458_p0)
}
 0x211   :  { %s462_s13 = scalar_lea.hbm %s587_s5, 128 }
 0x212   :  { %p463_p1 = scmp.ne.s32.totalorder %s587_s5, %s462_s13  ;;  %p466_p2 = scmp.lt.u32.totalorder %s462_s13, %s587_s5 }
 0x214   :  { %p468_p3 = pnand %p466_p2, %p463_p1 }
 0x216   :  { %471 = shalt.err (!%p468_p3)
}
 0x217   :  { %312 = dma.vmem_to_hbm [thread:$0]  %s310_s10, 128, %s587_s5, [#allocation4]  }
 0x218   :  { %476 = dma.done.wait [#allocation4], 128  }
 0x219   :  { %477 = vsyncadd [#allocation4], 4294967168 }
 0x21a   :  { %316 = vsyncpa [#allocation3], 1 }
 0x21b   :  { %317 = vsyncpa [#allocation6], 1 }
 0x21c   :  { %318 = vsyncpa [#allocation4], 1 }

</bundles_post_ra>
